<compile_context>
chip_gen: v5e
topology: v5e:2x2
jax: 0.10.0
libtpu: 0.0.40
codegen_flags: <defaults>
</compile_context>

<pallas_src>
import functools

import jax
import jax.numpy as jnp
import numpy as np
from jax.experimental import pallas as pl
from jax.experimental.pallas import tpu as pltpu


def _round_up(x, m):
    return (x + m - 1) // m * m


def _vmem_budget_bytes():
    """Generation-aware scoped-VMEM limit: ~75% of physical, capped at 64 MiB."""
    try:
        cap = int(pltpu.get_tpu_info().vmem_capacity_bytes)
    except Exception:
        cap = 64 * 1024 * 1024          # conservative fallback (v7x-sized)
    return max(32 * 1024 * 1024, min((cap * 3) // 4, 64 * 1024 * 1024))


def _pick_tiles(rows, hw, itemsize):
    """Row tiles for Pass A / Pass C and the shared lane (HW) tile."""
    sublane = max(8, 32 // itemsize)                 # f32 -> 8, bf16 -> 16
    tr_c = min(256, _round_up(rows, sublane))
    # Pass A's only parallel axis is rows; cap its row tile so there are at
    # least 2 row blocks whenever rows allows it (v7x second TensorCore).
    tr_a = min(tr_c, _round_up(pl.cdiv(rows, 2), sublane))
    # Lane tile sized so one (tr_c, T) tile is ~4 MiB, 128-lane aligned.
    tile_bytes = 4 * 1024 * 1024
    lane_cap = max(512, min(8192, (tile_bytes // (tr_c * itemsize)) // 128 * 128))
    t = min(lane_cap, _round_up(hw, 128))
    return tr_a, tr_c, t


# ----------------------------- Pass A: reduce -----------------------------
def _reduce_kernel(x_ref, sum_ref, max_ref, *, lane_tile, valid_cols, needs_mask):
    """Accumulate per-row sum & max over the HW (lane) grid axis.

    Outputs are resident accumulators (block index constant along the 't'
    axis, which is marked 'arbitrary'); they are initialized at t == 0.
    The lane mask is applied only on the final (partial) lane tile.
    """
    t = pl.program_id(1)

    @pl.when(t == 0)
    def _():
        sum_ref[...] = jnp.zeros_like(sum_ref)
        max_ref[...] = jnp.full_like(max_ref, -jnp.inf)

    x = x_ref[...].astype(jnp.float32)                       # (TR, T)

    def accumulate(x_sum, x_max):
        sum_ref[...] = sum_ref[...] + jnp.sum(x_sum, axis=-1, keepdims=True)
        max_ref[...] = jnp.maximum(max_ref[...],
                                   jnp.max(x_max, axis=-1, keepdims=True))

    if needs_mask:
        is_last = t == pl.num_programs(1) - 1

        @pl.when(jnp.logical_not(is_last))
        def _():
            accumulate(x, x)

        @pl.when(is_last)
        def _():
            col = t * lane_tile + jax.lax.broadcasted_iota(jnp.int32, x.shape, 1)
            valid = col < valid_cols
            accumulate(jnp.where(valid, x, 0.0), jnp.where(valid, x, -jnp.inf))
    else:
        accumulate(x, x)


# ----------------------------- Pass C: scale ------------------------------
def _scale_kernel(att_ref, x_ref, out_ref):
    """out = x * att, att broadcast per row over the lane (HW) axis."""
    x = x_ref[...]
    att = att_ref[...]
    if att.dtype != x.dtype:
        att = att.astype(x.dtype)
    out_ref[...] = (x * att).astype(out_ref.dtype)


# ------------------------------- wrapper ----------------------------------
def channel_attention_hsfpn(x_nchw, w1, w2, flag=True):
    """Forward of ChannelAttention_HSFPN.

    x_nchw: (N, C, H, W); w1: (C//ratio, C); w2: (C, C//ratio) — the 1x1 conv
    weights with the trailing (1, 1) dims squeezed.
    """
    N, C, H, W = x_nchw.shape
    HW = H * W
    rows = N * C
    dtype = x_nchw.dtype
    itemsize = jnp.dtype(dtype).itemsize

    TR_A, TR_C, T = _pick_tiles(rows, HW, itemsize)
    num_t = pl.cdiv(HW, T)
    vmem_limit = _vmem_budget_bytes()

    x2 = x_nchw.reshape(rows, HW)                  # free row-major view

    # ---- Pass A: streaming per-row sum / max over HW tiles (Pallas). ----
    pooled_sum, pooled_max = pl.pallas_call(
        functools.partial(_reduce_kernel, lane_tile=T, valid_cols=HW,
                          needs_mask=(HW % T != 0)),
        out_shape=(jax.ShapeDtypeStruct((rows, 1), jnp.float32),
                   jax.ShapeDtypeStruct((rows, 1), jnp.float32)),
        grid_spec=pltpu.PrefetchScalarGridSpec(
            num_scalar_prefetch=0,
            grid=(pl.cdiv(rows, TR_A), num_t),               # reduction axis last
            in_specs=[pl.BlockSpec((TR_A, T), lambda r, t: (r, t))],
            out_specs=[pl.BlockSpec((TR_A, 1), lambda r, t: (r, 0)),
                       pl.BlockSpec((TR_A, 1), lambda r, t: (r, 0))]),
        compiler_params=pltpu.CompilerParams(
            dimension_semantics=("parallel", "arbitrary"),
            vmem_limit_bytes=vmem_limit),
        cost_estimate=pl.CostEstimate(
            flops=2 * rows * HW, transcendentals=0,
            bytes_accessed=rows * HW * itemsize + 2 * rows * 4),
    )(x2)

    # ---- Pass B: shared MLP + sigmoid as two small GEMMs (plain XLA). ----
    avg = pooled_sum[:, 0].reshape(N, C) * (1.0 / HW)        # true HW divisor
    mx = pooled_max[:, 0].reshape(N, C)
    w1f = w1.astype(jnp.float32)
    w2f = w2.astype(jnp.float32)
    stacked = jnp.concatenate([avg, mx], axis=0)             # (2N, C)
    h = jnp.maximum(stacked @ w1f.T, 0.0)                    # (2N, Cr) — one GEMM
    logits = (h[:N] + h[N:]) @ w2f.T                         # linearity of conv2
    att = jax.nn.sigmoid(logits)                             # (N, C) f32

    if not flag:
        return att.reshape(N, C, 1, 1).astype(dtype)

    # f32 inputs keep f32 math; sub-f32 inputs (bf16) multiply natively.
    att_dtype = jnp.float32 if dtype == jnp.dtype(jnp.float32) else dtype
    att_rows = att.astype(att_dtype).reshape(rows, 1)

    # ---- Pass C: streaming channel-wise scaling of x (Pallas). ----
    out2 = pl.pallas_call(
        _scale_kernel,
        out_shape=jax.ShapeDtypeStruct((rows, HW), dtype),
        grid_spec=pltpu.PrefetchScalarGridSpec(
            num_scalar_prefetch=0,
            grid=(pl.cdiv(rows, TR_C), num_t),
            in_specs=[pl.BlockSpec((TR_C, 1), lambda r, t: (r, 0)),
                      pl.BlockSpec((TR_C, T), lambda r, t: (r, t))],
            out_specs=pl.BlockSpec((TR_C, T), lambda r, t: (r, t))),
        compiler_params=pltpu.CompilerParams(
            dimension_semantics=("parallel", "parallel"),
            vmem_limit_bytes=vmem_limit),
        cost_estimate=pl.CostEstimate(
            flops=rows * HW, transcendentals=0,
            bytes_accessed=2 * rows * HW * itemsize + rows * itemsize),
    )(att_rows, x2)

    return out2.reshape(N, C, H, W)


# --------------------------- test helpers ----------------------------------
def xavier_uniform(key, shape_out_in):
    # nn.init.xavier_uniform_ for a 1x1 conv weight (out, in, 1, 1).
    fan_out, fan_in = shape_out_in
    bound = np.sqrt(6.0 / (fan_in + fan_out))
    return jax.random.uniform(key, shape_out_in, jnp.float32, -bound, bound)


def reference(x, w1, w2):
    # pure-JAX reference of the PyTorch forward (flag=True)
    avg = jnp.mean(x, axis=(2, 3), keepdims=True)            # (N, C, 1, 1)
    mx = jnp.max(x, axis=(2, 3), keepdims=True)              # (N, C, 1, 1)

    def mlp(p):
        v = p[:, :, 0, 0]                                    # (N, C)
        h = jnp.maximum(v @ w1.T, 0.0)                       # (N, Cr)
        return h @ w2.T                                      # (N, C)

    out = mlp(avg) + mlp(mx)
    att = jax.nn.sigmoid(out)[:, :, None, None]
    return att * x


if __name__ == "__main__":
    key = jax.random.PRNGKey(0)
    k_x, k_w1, k_w2, k_x2, k_x3, k_w3, k_w4 = jax.random.split(key, 7)

    ca = jax.jit(channel_attention_hsfpn)

    # Test 1: 128-aligned spatial size (N=2, C=8, 16x16, ratio=4).
    N, C, H, W = 2, 8, 16, 16
    ratio = 4
    Cr = C // ratio
    x = jax.random.normal(k_x, (N, C, H, W), jnp.float32)
    w1 = xavier_uniform(k_w1, (Cr, C))      # conv1 weight (Cr, C, 1, 1) -> (Cr, C)
    w2 = xavier_uniform(k_w2, (C, Cr))      # conv2 weight (C, Cr, 1, 1) -> (C, Cr)
    y = jax.block_until_ready(ca(x, w1, w2))
    np.testing.assert_allclose(np.asarray(y), np.asarray(reference(x, w1, w2)),
                               rtol=1e-5, atol=1e-5)

    # Test 2: non-128-aligned HW (20x20) with all-negative values, exercising
    # the masked final lane tile (padded lanes must not win the max) and a
    # partial trailing row block on Pass A.
    N2, C2, H2, W2 = 3, 8, 20, 20
    x2 = -jnp.abs(jax.random.normal(k_x2, (N2, C2, H2, W2), jnp.float32)) - 0.1
    y2 = jax.block_until_ready(ca(x2, w1, w2))
    np.testing.assert_allclose(np.asarray(y2), np.asarray(reference(x2, w1, w2)),
                               rtol=1e-5, atol=1e-5)

    # Test 3: rows = N*C not a multiple of 8 (3*4=12), exercising partial row
    # blocks (OOB stores dropped) in both passes.
    N3, C3, H3, W3 = 3, 4, 20, 20
    Cr3 = C3 // 4
    x3 = jax.random.normal(k_x3, (N3, C3, H3, W3), jnp.float32)
    w13 = xavier_uniform(k_w3, (Cr3, C3))
    w23 = xavier_uniform(k_w4, (C3, Cr3))
    y3 = jax.block_until_ready(ca(x3, w13, w23))
    np.testing.assert_allclose(np.asarray(y3), np.asarray(reference(x3, w13, w23)),
                               rtol=1e-5, atol=1e-5)

    print("KERNEL_OK")
</pallas_src>

<mosaic_0001>
module attributes {stable_mosaic.version = 11 : i64} {
  func.func @_reduce_kernel(%arg0: i32, %arg1: i32, %arg2: memref<8x256xf32, #tpu.memory_space<vmem>>, %arg3: memref<8x1xf32, #tpu.memory_space<vmem>>, %arg4: memref<8x1xf32, #tpu.memory_space<vmem>>) attributes {dimension_semantics = [#tpu.dimension_semantics<parallel>, #tpu.dimension_semantics<arbitrary>], iteration_bounds = array<i64: 2, 1>, scalar_prefetch = 0 : i64, scratch_operands = 0 : i64, tpu.core_type = #tpu.core_type<tc>, window_params = [{transform_indices = @transform_0, window_bounds = array<i64: 8, 256>}, {transform_indices = @transform_1, window_bounds = array<i64: 8, 1>}, {transform_indices = @transform_2, window_bounds = array<i64: 8, 1>}]} {
    %c0_i32 = arith.constant 0 : i32
    %0 = arith.cmpi eq, %arg1, %c0_i32 : i32
    %1 = arith.extui %0 : i1 to i32
    %c0_i32_0 = arith.constant 0 : i32
    %2 = arith.cmpi ne, %1, %c0_i32_0 : i32
    scf.if %2 {
      %cst_11 = arith.constant 0.000000e+00 : f32
      %14 = vector.broadcast %cst_11 : f32 to vector<8x1xf32>
      %c0_12 = arith.constant 0 : index
      %c0_13 = arith.constant 0 : index
      %15 = vector.load %arg3[%c0_12, %c0_13] : memref<8x1xf32, #tpu.memory_space<vmem>>, vector<8x1xf32>
      tpu.vector_store %arg3[%c0_12, %c0_13], %14 {strides = array<i32>} : memref<8x1xf32, #tpu.memory_space<vmem>>, vector<8x1xf32>,
      %cst_14 = arith.constant 0xFF800000 : f32
      %16 = vector.broadcast %cst_14 : f32 to vector<8x1xf32>
      %c0_15 = arith.constant 0 : index
      %c0_16 = arith.constant 0 : index
      %17 = vector.load %arg4[%c0_15, %c0_16] : memref<8x1xf32, #tpu.memory_space<vmem>>, vector<8x1xf32>
      tpu.vector_store %arg4[%c0_15, %c0_16], %16 {strides = array<i32>} : memref<8x1xf32, #tpu.memory_space<vmem>>, vector<8x1xf32>,
    } else {
    }
    %c0 = arith.constant 0 : index
    %c0_1 = arith.constant 0 : index
    %3 = vector.load %arg2[%c0, %c0_1] : memref<8x256xf32, #tpu.memory_space<vmem>>, vector<8x256xf32>
    %c0_2 = arith.constant 0 : index
    %c0_3 = arith.constant 0 : index
    %4 = vector.load %arg3[%c0_2, %c0_3] : memref<8x1xf32, #tpu.memory_space<vmem>>, vector<8x1xf32>
    %cst = arith.constant dense<0.000000e+00> : vector<8xf32>
    %5 = vector.multi_reduction <add>, %3, %cst [1] : vector<8x256xf32> to vector<8xf32>
    %6 = vector.shape_cast %5 : vector<8xf32> to vector<8x1xf32>
    %7 = arith.addf %4, %6 : vector<8x1xf32>
    %c0_4 = arith.constant 0 : index
    %c0_5 = arith.constant 0 : index
    %8 = vector.load %arg3[%c0_4, %c0_5] : memref<8x1xf32, #tpu.memory_space<vmem>>, vector<8x1xf32>
    tpu.vector_store %arg3[%c0_4, %c0_5], %7 {strides = array<i32>} : memref<8x1xf32, #tpu.memory_space<vmem>>, vector<8x1xf32>,
    %c0_6 = arith.constant 0 : index
    %c0_7 = arith.constant 0 : index
    %9 = vector.load %arg4[%c0_6, %c0_7] : memref<8x1xf32, #tpu.memory_space<vmem>>, vector<8x1xf32>
    %cst_8 = arith.constant dense<0xFF800000> : vector<8xf32>
    %10 = vector.multi_reduction <maximumf>, %3, %cst_8 [1] : vector<8x256xf32> to vector<8xf32>
    %11 = vector.shape_cast %10 : vector<8xf32> to vector<8x1xf32>
    %12 = arith.maximumf %9, %11 : vector<8x1xf32>
    %c0_9 = arith.constant 0 : index
    %c0_10 = arith.constant 0 : index
    %13 = vector.load %arg4[%c0_9, %c0_10] : memref<8x1xf32, #tpu.memory_space<vmem>>, vector<8x1xf32>
    tpu.vector_store %arg4[%c0_9, %c0_10], %12 {strides = array<i32>} : memref<8x1xf32, #tpu.memory_space<vmem>>, vector<8x1xf32>,
    return
  }
  func.func @transform_0(%arg0: i32, %arg1: i32) -> (i32, i32) {
    %c0_i32 = arith.constant 0 : i32
    return %arg0, %arg1 : i32, i32
  }
  func.func @transform_1(%arg0: i32, %arg1: i32) -> (i32, i32) {
    %c0_i32 = arith.constant 0 : i32
    %c0_i32_0 = arith.constant 0 : i32
    return %arg0, %c0_i32 : i32, i32
  }
  func.func @transform_2(%arg0: i32, %arg1: i32) -> (i32, i32) {
    %c0_i32 = arith.constant 0 : i32
    %c0_i32_0 = arith.constant 0 : i32
    return %arg0, %c0_i32 : i32, i32
  }
}

module attributes {stable_mosaic.version = 11 : i64} {
  func.func @_scale_kernel(%arg0: i32, %arg1: i32, %arg2: memref<16x1xf32, #tpu.memory_space<vmem>>, %arg3: memref<16x256xf32, #tpu.memory_space<vmem>>, %arg4: memref<16x256xf32, #tpu.memory_space<vmem>>) attributes {dimension_semantics = [#tpu.dimension_semantics<parallel>, #tpu.dimension_semantics<parallel>], iteration_bounds = array<i64: 1, 1>, scalar_prefetch = 0 : i64, scratch_operands = 0 : i64, tpu.core_type = #tpu.core_type<tc>, window_params = [{transform_indices = @transform_0, window_bounds = array<i64: 16, 1>}, {transform_indices = @transform_1, window_bounds = array<i64: 16, 256>}, {transform_indices = @transform_2, window_bounds = array<i64: 16, 256>}]} {
    %c0 = arith.constant 0 : index
    %c0_0 = arith.constant 0 : index
    %0 = vector.load %arg3[%c0, %c0_0] : memref<16x256xf32, #tpu.memory_space<vmem>>, vector<16x256xf32>
    %c0_1 = arith.constant 0 : index
    %c0_2 = arith.constant 0 : index
    %1 = vector.load %arg2[%c0_1, %c0_2] : memref<16x1xf32, #tpu.memory_space<vmem>>, vector<16x1xf32>
    %2 = vector.broadcast %1 : vector<16x1xf32> to vector<16x256xf32>
    %3 = arith.mulf %0, %2 : vector<16x256xf32>
    %c0_3 = arith.constant 0 : index
    %c0_4 = arith.constant 0 : index
    %4 = vector.load %arg4[%c0_3, %c0_4] : memref<16x256xf32, #tpu.memory_space<vmem>>, vector<16x256xf32>
    tpu.vector_store %arg4[%c0_3, %c0_4], %3 {strides = array<i32>} : memref<16x256xf32, #tpu.memory_space<vmem>>, vector<16x256xf32>,
    return
  }
  func.func @transform_0(%arg0: i32, %arg1: i32) -> (i32, i32) {
    %c0_i32 = arith.constant 0 : i32
    %c0_i32_0 = arith.constant 0 : i32
    return %arg0, %c0_i32 : i32, i32
  }
  func.func @transform_1(%arg0: i32, %arg1: i32) -> (i32, i32) {
    %c0_i32 = arith.constant 0 : i32
    return %arg0, %arg1 : i32, i32
  }
  func.func @transform_2(%arg0: i32, %arg1: i32) -> (i32, i32) {
    %c0_i32 = arith.constant 0 : i32
    return %arg0, %arg1 : i32, i32
  }
}

</mosaic_0001>

<bundles_post_ra>
// kernel: channel_attention_hsfpn.2
= control target key start
LH: loop header
LB: loop body
LE: loop exit
PB: predicated region body
PF: predicated region fallthrough
CT: control target
= control target key end

     0   :  { %s380_s9 = smov 0   ;;  %s382_s10 = smov 0   ;;  %s420_s0 = inlined_call_operand.vmem [shape: f32[16,256], index: 0, kind: input, shape index: {}]   ;;  %s421_s1 = inlined_call_operand.vmem [shape: f32[16,1], index: 1, kind: output, shape index: {0}]   ;;  %s422_s2 = inlined_call_operand.vmem [shape: f32[16,1], index: 2, kind: output, shape index: {1}]  }
   0x1   :  { %s384_s11 = smov 0  }
   0x2 LB: > { %s25_s12 = sadd.s32 1, %s357_s10  ;;  %p305_p0 = scmp.ge.s32.totalorder %s361_s11, 1  ;;  %s361_s11 = sphi %s384_s11, %s13_s11   ;;  %s357_s10 = sphi %s382_s10, %s424_s10   ;;  %s353_s9 = sphi %s380_s9, %s423_s9  }
   0x3   : > { %p27_p1 = scmp.ge.s32.totalorder %s25_s12, 2  ;;  %p134_p2 = scmp.lt.s32.totalorder %s361_s11, 3 }
   0x5   : > { %s426_s12 = smov (%p27_p1, %s25_s12), 0  ;;  %p135_p3 = pnand %p305_p0, %p134_p2 }
   0x6   : > { %p164_p4 = scmp.lt.s32.totalorder (!%p135_p3), %s353_s9, 1 }
   0x7   : > { %138 = sbr.rel (%p135_p3) target bundleno = 145 (0x91), region = 24 }
   0xc   : > { %s428_s9 = smov (!%p164_p4, %s353_s9), 1  ;;  %vm185_vm0 = vcmask 7168   ;;  %v363_v2 = vmov 0.0   ;;  %v364_v5 = vmov -inf  }
   0xd   : > { %s312_s13 = sshll.u32 %s428_s9, 4  ;;  %s308_s14 = sshll.u32 %s428_s9, 3 }
   0xe   : > { %s171_s17 = scalar_lea.vmem %s420_s0, %s312_s13  ;;  %s176_s20 = scalar_lea.vmem %s421_s1, %s308_s14 }
   0xf   : > { %v188_v0 = vld [vmem:[%s171_s17] sm:$0xff]  ;;  %v189_v1 = vld [vmem:[%s171_s17 + $0x8] sm:$0xff]  ;;  %186 = vst.msk [vmem:[%s176_s20] sm:$0xff] %vm185_vm0, %v363_v2  ;;  %s180_s23 = scalar_lea.vmem %s422_s2, %s308_s14 }
  0x10   : > { %v191_v3 = vadd.f32 %v189_v1, %v188_v0  ;;  %v198_v4 = vmax.f32 %v188_v0, %v189_v1  ;;  %187 = vst.msk [vmem:[%s180_s23] sm:$0xff] %vm185_vm0, %v364_v5 }
  0x12   : > { %192 = vadd.xlane.f32.xlu0 %v191_v3 }
  0x16   : > { %v190_v6 = vld [vmem:[%s176_s20] sm:$0xff] }
  0x17   : > { %v197_v9 = vld [vmem:[%s180_s23] sm:$0xff] }
  0x1a   : > { %199 = vmax.xlane.f32.xlu0 %v198_v4 }
  0x85   : > { %v193_v7 = vpop.xlane.xlu0 %192 }
  0x86   : > { %v194_v8 = vadd.f32 %v193_v7, %v190_v6 }
  0x88   : > { %196 = vst.msk [vmem:[%s176_s20] sm:$0xff] %vm185_vm0, %v194_v8 }
  0x8d   : > { %v200_v10 = vpop.xlane.xlu0 %199 }
  0x8e   : > { %v201_v11 = vmax.f32 %v197_v9, %v200_v10 }
  0x90   : > { %202 = vst.msk [vmem:[%s180_s23] sm:$0xff] %vm185_vm0, %v201_v11 }
  0x91 PF: > { %s13_s11 = sadd.s32 1, %s361_s11   ;;  %s423_s9 = smov %s357_s10 }
  0x92   : > { %p10_p5 = scmp.ge.s32.totalorder %s13_s11, 4   ;;  %s424_s10 = smov %s426_s12 }
  0x94   :  { %12 = sbr.rel (!%p10_p5) target bundleno = 2 (0x2), region = 70 }

// kernel: channel_attention_hsfpn.3
= control target key start
LH: loop header
LB: loop body
LE: loop exit
PB: predicated region body
PF: predicated region fallthrough
CT: control target
= control target key end

     0   :  { %v41_v0 = vmov 0   ;;  %s87_s0 = inlined_call_operand.vmem [shape: f32[16,1], index: 0, kind: input, shape index: {}]   ;;  %s88_s1 = inlined_call_operand.vmem [shape: f32[16,256], index: 1, kind: input, shape index: {}]   ;;  %s89_s2 = inlined_call_operand.vmem [shape: f32[16,256], index: 2, kind: output, shape index: {}]  }
   0x1   :  { %40 = vset.pattern.permute.xlu0 %v41_v0  ;;  %v15_v1 = vld [vmem:[%s87_s0] sm:$0xff]  ;;  %v16_v2 = vld [vmem:[%s87_s0 + $0x8] sm:$0xff]  ;;  %v13_v8 = vld [vmem:[%s88_s1 + $0x10] sm:$0xff] }
   0x2   :  { %19 = vperm.xlu0 %40, %v15_v1   ;;  %v11_v3 = vld [vmem:[%s88_s1] sm:$0xff]  ;;  %v12_v4 = vld [vmem:[%s88_s1 + $0x8] sm:$0xff]  ;;  %v14_v9 = vld [vmem:[%s88_s1 + $0x18] sm:$0xff] }
   0xa   :  { %24 = vperm.xlu0 %40, %v16_v2  }
  0x74   :  { %v20_v5 = vpop.permute.xlu0 %19 }
  0x75   :  { %v27_v6 = vmul.f32 %v20_v5, %v11_v3  ;;  %v28_v7 = vmul.f32 %v20_v5, %v12_v4 }
  0x77   :  { %31 = vst [vmem:[%s89_s2] sm:$0xff] %v27_v6 }
  0x78   :  { %32 = vst [vmem:[%s89_s2 + $0x8] sm:$0xff] %v28_v7 }
  0x7c   :  { %v25_v10 = vpop.permute.xlu0 %24 }
  0x7d   :  { %v29_v11 = vmul.f32 %v25_v10, %v13_v8  ;;  %v30_v12 = vmul.f32 %v25_v10, %v14_v9 }
  0x7f   :  { %33 = vst [vmem:[%s89_s2 + $0x10] sm:$0xff] %v29_v11 }
  0x80   :  { %34 = vst [vmem:[%s89_s2 + $0x18] sm:$0xff] %v30_v12 }

</bundles_post_ra>
